<compile_context>
chip_gen: v6e
topology: v6e:2x2x1
jax: 0.10.0
libtpu: 0.0.40
codegen_flags: <defaults>
</compile_context>

<pallas_src>
import functools

import jax
import jax.numpy as jnp
import numpy as np
from jax import lax
from jax.experimental import pallas as pl
from jax.experimental.pallas import tpu as pltpu


# ------------------------------------------------------------------
# small helpers
# ------------------------------------------------------------------
def _round_up(a, b):
    return (a + b - 1) // b * b


def _vmem_capacity_bytes():
    try:
        cap = int(getattr(pltpu.get_tpu_info(), "vmem_capacity_bytes", 0))
        if cap > 0:
            return cap
    except Exception:
        pass
    return 64 << 20  # conservative fallback: v7x per-TensorCore VMEM


def _choose_tile(M, Cin, Cols_pad, bpe_in, bpe_out, tm_req):
    """Pick a lane-aligned row tile (multiple of 128, or full M) and a scoped-VMEM limit."""
    cap = _vmem_capacity_bytes()
    # generation-aware tiling budget: ~24 MiB on 64 MiB parts (v7x), ~56 MiB on 128 MiB parts
    budget = min(max(cap // 2 - (8 << 20), 16 << 20), 64 << 20)
    cin_lanes = _round_up(Cin, 128)  # the (tm, Cin) LHS block is lane-padded in VMEM

    def wset(t):
        return (2 * t * cin_lanes * bpe_in      # double-buffered X block (lane-padded)
                + 2 * Cin * Cols_pad * bpe_in   # weight block (double-buffered; see TODO)
                + 2 * t * Cols_pad * bpe_out    # double-buffered output block
                + 2 * t * Cols_pad * 4          # in-kernel f32 temporaries (y, y*scale+shift)
                + 4 * Cols_pad * 4)             # scale / shift blocks

    if tm_req is not None:
        tm = M if tm_req >= M else max(128, (tm_req // 128) * 128)
    else:
        tm = 128
        for cand in (2048, 1024, 512, 256, 128):
            if wset(cand) <= budget:
                tm = cand
                break
        if M > 128:
            # keep >= 2 row tiles so the "parallel" grid axis can split across megacore TCs (v7x)
            tm = min(tm, _round_up(pl.cdiv(M, 2), 128))
        if tm >= M:
            tm = M

    limit_cap = max(cap - (16 << 20), 32 << 20)   # ~48 MiB on v7x, ~112 MiB on 128 MiB parts
    vmem_limit = int(min(max(int(wset(max(tm, 128)) * 1.5), 32 << 20), limit_cap))
    return tm, vmem_limit


# ------------------------------------------------------------------
# pass 1: Gram-matrix statistics  (G = X^T X, xsum = 1^T X), tiny per-tile partial outputs
# ------------------------------------------------------------------
def _gram_kernel(xt_ref, gram_ref, xsum_ref, *, m_total, tm, mask_rows):
    x = xt_ref[...].astype(jnp.float32)                       # (Cin_p, tm); stats always in f32
    if mask_rows:  # static: only emitted when M % tm != 0 (ragged last tile exists)
        lane = jax.lax.broadcasted_iota(jnp.int32, x.shape, 1) + pl.program_id(0) * tm
        x = jnp.where(lane < m_total, x, jnp.zeros_like(x))
    # contract the lane (M) axis of both operands: X_tile @ X_tile^T  -> (Cin_p, Cin_p)
    gram = lax.dot_general(x, x, (((1,), (1,)), ((), ())),
                           preferred_element_type=jnp.float32)
    gram_ref[...] = gram[None]
    xsum_ref[...] = jnp.sum(x, axis=1, keepdims=True)[None]   # (1, Cin_p, 1)


def _gram_stats(x_t, *, tm, vmem_limit):
    Cin_p, M = x_t.shape
    grid_m = pl.cdiv(M, tm)
    kernel = functools.partial(_gram_kernel, m_total=M, tm=tm, mask_rows=(M % tm != 0))
    gram_p, xsum_p = pl.pallas_call(
        kernel,
        out_shape=(
            jax.ShapeDtypeStruct((grid_m, Cin_p, Cin_p), jnp.float32),
            jax.ShapeDtypeStruct((grid_m, Cin_p, 1), jnp.float32),
        ),
        grid_spec=pltpu.PrefetchScalarGridSpec(
            num_scalar_prefetch=0,
            grid=(grid_m,),
            in_specs=[pl.BlockSpec((Cin_p, tm), lambda i: (0, i))],
            out_specs=[
                pl.BlockSpec((1, Cin_p, Cin_p), lambda i: (i, 0, 0)),
                pl.BlockSpec((1, Cin_p, 1), lambda i: (i, 0, 0)),
            ],
        ),
        compiler_params=pltpu.CompilerParams(
            dimension_semantics=("parallel",),
            vmem_limit_bytes=vmem_limit,
        ),
    )(x_t)
    gram = jnp.sum(gram_p, axis=0)          # (Cin_p, Cin_p)
    xsum = jnp.sum(xsum_p, axis=0)[:, 0]    # (Cin_p,)
    return gram, xsum


# ------------------------------------------------------------------
# pass 2: matmul + fused folded-BN scale/shift + ReLU, lane-dense store in out_dtype
# ------------------------------------------------------------------
def _deconv_norm_kernel(x_ref, w_ref, scale_ref, shift_ref, o_ref):
    y = jnp.dot(x_ref[...], w_ref[...], preferred_element_type=jnp.float32)   # (tm, Cols_pad) f32
    z = y * scale_ref[...] + shift_ref[...]                                   # one FMA per element
    o_ref[...] = jnp.maximum(z, 0.0).astype(o_ref.dtype)


def _deconv_norm(x_flat, w_pad, scale, shift, out_dtype, *, tm, vmem_limit):
    M, Cin = x_flat.shape
    _, Cols_pad = w_pad.shape
    grid_m = pl.cdiv(M, tm)
    return pl.pallas_call(
        _deconv_norm_kernel,
        out_shape=jax.ShapeDtypeStruct((M, Cols_pad), out_dtype),
        grid_spec=pltpu.PrefetchScalarGridSpec(
            num_scalar_prefetch=0,
            grid=(grid_m,),
            in_specs=[
                pl.BlockSpec((tm, Cin), lambda i: (i, 0)),
                pl.BlockSpec((Cin, Cols_pad), lambda i: (0, 0)),   # constant block -> no re-DMA
                pl.BlockSpec((1, Cols_pad), lambda i: (0, 0)),
                pl.BlockSpec((1, Cols_pad), lambda i: (0, 0)),
            ],
            out_specs=pl.BlockSpec((tm, Cols_pad), lambda i: (i, 0)),
        ),
        compiler_params=pltpu.CompilerParams(
            dimension_semantics=("parallel",),
            vmem_limit_bytes=vmem_limit,
        ),
    )(x_flat, w_pad, scale, shift)


# ------------------------------------------------------------------
# full module forward
# ------------------------------------------------------------------
def basic_deconv2d(x_nchw, weight, gamma, beta, *, stride, eps=1e-5,
                   compute_dtype=jnp.bfloat16, out_dtype=None, out_layout="NCHW", tm=None):
    """x_nchw: (N, Cin, H, W); weight: ConvTranspose2d layout (Cin, Cout, KH, KW).

    compute_dtype: MXU feed dtype for X/W (default bf16 on all generations; stats, BN and ReLU
    stay f32).  out_dtype defaults to x dtype; bf16 recommended when the consumer allows it.
    out_layout: "NCHW" (matches PyTorch) or "NHWC" (skips the big transpose entirely).
    """
    N, Cin, H, W = x_nchw.shape
    Cin_w, Cout, KH, KW = weight.shape
    assert Cin == Cin_w
    assert stride == KH == KW, "kernel only supports stride == kernel_size, padding == 0"

    if out_dtype is None:
        out_dtype = x_nchw.dtype

    M = N * H * W
    Cols = KH * KW * Cout
    Cols_pad = _round_up(Cols, 128)        # lane-dense stores + full MXU N-dim
    Cin_p = _round_up(Cin, 8)              # sublane-aligned stats layout

    bpe_in = jnp.dtype(compute_dtype).itemsize
    bpe_out = jnp.dtype(out_dtype).itemsize
    tm_eff, vmem_limit = _choose_tile(M, Cin, Cols_pad, bpe_in, bpe_out, tm)

    # glue on the SMALL tensors only (input + weights); the big activation touches HBM exactly
    # once: the pass-2 output write.
    x_flat = jnp.transpose(x_nchw, (0, 2, 3, 1)).reshape(M, Cin).astype(compute_dtype)   # (M, Cin)
    x_t = jnp.transpose(x_nchw, (1, 0, 2, 3)).reshape(Cin, M).astype(compute_dtype)      # (Cin, M)
    if Cin_p > Cin:
        x_t = jnp.pad(x_t, ((0, Cin_p - Cin), (0, 0)))
    # columns ordered (kh, kw, cout), cout fastest
    w_cols = jnp.transpose(weight, (0, 2, 3, 1)).reshape(Cin, Cols).astype(compute_dtype)
    w_pad = jnp.pad(w_cols, ((0, 0), (0, Cols_pad - Cols))) if Cols_pad > Cols else w_cols

    # ---- pass 1: Gram stats (2*M*Cin^2 FLOPs; Y never exists anywhere) ----
    gram, xsum = _gram_stats(x_t, tm=tm_eff, vmem_limit=vmem_limit)
    gram = gram[:Cin, :Cin]
    xsum = xsum[:Cin]

    # tiny Cols-sized epilogue in f32:  col_sum = xsum @ W ;  col_sq[j] = w_j^T G w_j
    w32 = w_cols.astype(jnp.float32)
    col_sum = xsum @ w32                                   # (Cols,)
    col_sq = jnp.sum((gram @ w32) * w32, axis=0)           # (Cols,)
    ch_sum = col_sum.reshape(KH * KW, Cout).sum(axis=0)    # fold KH*KW column groups per channel
    ch_sq = col_sq.reshape(KH * KW, Cout).sum(axis=0)
    count = float(M * KH * KW)                             # = N * H_out * W_out
    mean = ch_sum / count
    var = jnp.maximum(ch_sq / count - mean * mean, 0.0)    # biased batch variance (PyTorch train BN)

    # fold BN into per-channel scale/shift, tiled across the KH*KW column groups, zero-padded
    a = gamma.astype(jnp.float32) * lax.rsqrt(var + eps)
    b = beta.astype(jnp.float32) - mean * a
    scale = jnp.pad(jnp.tile(a, KH * KW), (0, Cols_pad - Cols)).reshape(1, Cols_pad)
    shift = jnp.pad(jnp.tile(b, KH * KW), (0, Cols_pad - Cols)).reshape(1, Cols_pad)

    # ---- pass 2: fused matmul + BN + ReLU, single lane-dense (M, Cols_pad) write in out_dtype ----
    z = _deconv_norm(x_flat, w_pad, scale, shift, out_dtype, tm=tm_eff, vmem_limit=vmem_limit)

    # slice off the Cols pad and pixel-shuffle; "NHWC" avoids the channel transpose entirely,
    # "NCHW" does one fused slice+transpose in out_dtype to match the PyTorch interface.
    z = z[:, :Cols].reshape(N, H, W, KH, KW, Cout)
    if out_layout == "NHWC":
        return jnp.transpose(z, (0, 1, 3, 2, 4, 5)).reshape(N, H * KH, W * KW, Cout)
    return jnp.transpose(z, (0, 5, 1, 3, 2, 4)).reshape(N, Cout, H * KH, W * KW)


# ------------------------------------------------------------------
# pure-JAX reference for verification
# ------------------------------------------------------------------
def reference(x_nchw, weight, gamma, beta, *, stride, eps=1e-5):
    N, Cin, H, W = x_nchw.shape
    _, Cout, KH, KW = weight.shape
    # conv transpose with stride == kernel, padding == 0: no overlapping taps
    out6 = jnp.einsum("ncij,cokl->noikjl", x_nchw, weight)    # (N, Cout, H, KH, W, KW)
    out = out6.reshape(N, Cout, H * KH, W * KW)
    mean = out.mean(axis=(0, 2, 3), keepdims=True)
    var = ((out - mean) ** 2).mean(axis=(0, 2, 3), keepdims=True)
    g = gamma.reshape(1, Cout, 1, 1)
    b = beta.reshape(1, Cout, 1, 1)
    return jnp.maximum((out - mean) * jax.lax.rsqrt(var + eps) * g + b, 0.0)


if __name__ == "__main__":
    key = jax.random.PRNGKey(0)
    k_x, k_w, k_x2 = jax.random.split(key, 3)

    # ConvTranspose2d(4, 8, kernel_size=2, stride=2, padding=0), N=2, H=W=16
    N, Cin, H, W = 2, 4, 16, 16
    Cout, K, stride = 8, 2, 2

    x = jax.random.normal(k_x, (N, Cin, H, W), dtype=jnp.float32)
    weight = 0.1 * jax.random.normal(k_w, (Cin, Cout, K, K), dtype=jnp.float32)
    gamma = jnp.linspace(0.5, 1.5, Cout, dtype=jnp.float32)
    beta = jnp.linspace(-0.2, 0.2, Cout, dtype=jnp.float32)

    ref = reference(x, weight, gamma, beta, stride=stride)

    # default path: bf16 MXU feed, f32 stats/BN/ReLU, f32 output, NCHW
    out = jax.block_until_ready(basic_deconv2d(x, weight, gamma, beta, stride=stride))
    assert out.shape == (N, Cout, H * stride, W * stride)
    np.testing.assert_allclose(np.asarray(out), np.asarray(ref), rtol=1e-1, atol=1e-1)

    # full-f32 compute path: tight tolerance
    out_f32 = jax.block_until_ready(
        basic_deconv2d(x, weight, gamma, beta, stride=stride, compute_dtype=jnp.float32))
    np.testing.assert_allclose(np.asarray(out_f32), np.asarray(ref), rtol=1e-4, atol=1e-4)

    # ragged / multi-tile path: H=W=9 -> M=162, tm=128 -> 2 row tiles, last tile ragged
    x2 = jax.random.normal(k_x2, (N, Cin, 9, 9), dtype=jnp.float32)
    ref2 = reference(x2, weight, gamma, beta, stride=stride)
    out2 = jax.block_until_ready(
        basic_deconv2d(x2, weight, gamma, beta, stride=stride,
                       compute_dtype=jnp.float32, tm=128))
    np.testing.assert_allclose(np.asarray(out2), np.asarray(ref2), rtol=1e-4, atol=1e-4)

    # bf16 output + NHWC (no NCHW transpose) path — loose tolerance
    out3 = jax.block_until_ready(
        basic_deconv2d(x, weight, gamma, beta, stride=stride,
                       out_dtype=jnp.bfloat16, out_layout="NHWC"))
    ref3 = jnp.transpose(ref, (0, 2, 3, 1))
    np.testing.assert_allclose(np.asarray(out3.astype(jnp.float32)), np.asarray(ref3),
                               rtol=1e-1, atol=1e-1)

    print("KERNEL_OK")
</pallas_src>

<mosaic_0001>
module attributes {stable_mosaic.version = 11 : i64} {
  func.func @_gram_kernel(%arg0: i32, %arg1: memref<8x256xbf16, #tpu.memory_space<vmem>>, %arg2: memref<1x8x8xf32, #tpu.memory_space<vmem>>, %arg3: memref<1x8x1xf32, #tpu.memory_space<vmem>>) attributes {dimension_semantics = [#tpu.dimension_semantics<parallel>], iteration_bounds = array<i64: 2>, scalar_prefetch = 0 : i64, scratch_operands = 0 : i64, tpu.core_type = #tpu.core_type<tc>, window_params = [{transform_indices = @transform_0, window_bounds = array<i64: 8, 256>}, {transform_indices = @transform_1, window_bounds = array<i64: 1, 8, 8>}, {transform_indices = @transform_2, window_bounds = array<i64: 1, 8, 1>}]} {
    %c0 = arith.constant 0 : index
    %c0_0 = arith.constant 0 : index
    %0 = vector.load %arg1[%c0, %c0_0] : memref<8x256xbf16, #tpu.memory_space<vmem>>, vector<8x256xbf16>
    %1 = arith.extf %0 : vector<8x256xbf16> to vector<8x256xf32>
    %cst = arith.constant dense<0.000000e+00> : vector<8x8xf32>
    %2 = tpu.matmul %1, %1, %cst {dimension_numbers = #tpu.dot_dimension_numbers<[1], [1], [0], [0], [0, 0, 1, 0], [], []>} : vector<8x256xf32>, vector<8x256xf32>, vector<8x8xf32> -> vector<8x8xf32>
    %3 = vector.shape_cast %2 : vector<8x8xf32> to vector<1x8x8xf32>
    %c0_1 = arith.constant 0 : index
    %c0_2 = arith.constant 0 : index
    %c0_3 = arith.constant 0 : index
    %4 = vector.load %arg2[%c0_1, %c0_2, %c0_3] : memref<1x8x8xf32, #tpu.memory_space<vmem>>, vector<1x8x8xf32>
    tpu.vector_store %arg2[%c0_1, %c0_2, %c0_3], %3 {strides = array<i32>} : memref<1x8x8xf32, #tpu.memory_space<vmem>>, vector<1x8x8xf32>,
    %cst_4 = arith.constant dense<0.000000e+00> : vector<8xf32>
    %5 = vector.multi_reduction <add>, %1, %cst_4 [1] : vector<8x256xf32> to vector<8xf32>
    %6 = vector.shape_cast %5 : vector<8xf32> to vector<8x1xf32>
    %7 = vector.shape_cast %6 : vector<8x1xf32> to vector<1x8x1xf32>
    %c0_5 = arith.constant 0 : index
    %c0_6 = arith.constant 0 : index
    %c0_7 = arith.constant 0 : index
    %8 = vector.load %arg3[%c0_5, %c0_6, %c0_7] : memref<1x8x1xf32, #tpu.memory_space<vmem>>, vector<1x8x1xf32>
    tpu.vector_store %arg3[%c0_5, %c0_6, %c0_7], %7 {strides = array<i32>} : memref<1x8x1xf32, #tpu.memory_space<vmem>>, vector<1x8x1xf32>,
    return
  }
  func.func @transform_0(%arg0: i32) -> (i32, i32) {
    %c0_i32 = arith.constant 0 : i32
    %c0_i32_0 = arith.constant 0 : i32
    return %c0_i32, %arg0 : i32, i32
  }
  func.func @transform_1(%arg0: i32) -> (i32, i32, i32) {
    %c0_i32 = arith.constant 0 : i32
    %c0_i32_0 = arith.constant 0 : i32
    %c0_i32_1 = arith.constant 0 : i32
    return %arg0, %c0_i32, %c0_i32_0 : i32, i32, i32
  }
  func.func @transform_2(%arg0: i32) -> (i32, i32, i32) {
    %c0_i32 = arith.constant 0 : i32
    %c0_i32_0 = arith.constant 0 : i32
    %c0_i32_1 = arith.constant 0 : i32
    return %arg0, %c0_i32, %c0_i32_0 : i32, i32, i32
  }
}

</mosaic_0001>

<bundles_post_ra>
// kernel: tpu_custom_call.1
= control target key start
LH: loop header
LB: loop body
LE: loop exit
PB: predicated region body
PF: predicated region fallthrough
CT: control target
= control target key end

     0   :  { %8 = vsyncpa [#allocation3], 0  ;;  %s697_s0 = inlined_call_operand.hbm [shape: bf16[8,512], index: 0, kind: input, shape index: {}]   ;;  %s698_s1 = inlined_call_operand.hbm [shape: f32[2,8,8], index: 1, kind: output, shape index: {0}]   ;;  %s699_s2 = inlined_call_operand.vmem [shape: f32[2,8,1], index: 2, kind: output, shape index: {1}]  }
   0x1   :  { %10 = vsyncpa [#allocation3 + $0x1], 0 }
   0x2   :  { %11 = vsyncpa [#allocation4], 0 }
   0x3   :  { %13 = vsyncpa [#allocation4 + $0x1], 0  ;;  %s539_s9 = smov 0   ;;  %s541_s10 = smov 0  }
   0x4   :  { %s543_s11 = smov 0   ;;  %s545_s12 = smov 0  }
   0x5 LB: > { %s560_s13 = sadd.s32 4294967295, %s520_s12   ;;  %s367_s14 = sadd.s32 4294967294, %s520_s12   ;;  %s520_s12 = sphi %s545_s12, %s716_s12   ;;  %s516_s11 = sphi %s543_s11, %s715_s11   ;;  %s512_s10 = sphi %s541_s10, %s714_s10   ;;  %s508_s9 = sphi %s539_s9, %s713_s9  }
   0x6   : > { %s564_s15 = sadd.s32 1, %s520_s12   ;;  %s26_s16 = sadd.s32 1, %s516_s11 }
   0x7   : > { %s23_s17 = ssub.s32 %s520_s12, %s564_s15  ;;  %p33_p0 = scmp.ne.s32.totalorder %s516_s11, %s512_s10 }
   0x8   : > { %p24_p1 = scmp.eq.s32.totalorder %s23_s17, 0  ;;  %p34_p2 = scmp.eq.s32.totalorder %s520_s12, 0 }
   0x9   : > { %p39_p3 = scmp.ne.s32.totalorder %s512_s10, %s508_s9  ;;  %p40_p4 = scmp.eq.s32.totalorder %s560_s13, 0 }
   0xa   : > { %s576_s18 = scalar_select %p24_p1, %s516_s11, %s26_s16  }
   0xb   : > { %p578_p5 = por %p34_p2, %p33_p0  ;;  %p582_p6 = por %p40_p4, %p39_p3 }
   0xc   : > { %p63_p7 = scmp.eq.s32.totalorder %s560_s13, 1  ;;  %p69_p8 = scmp.eq.s32.totalorder %s367_s14, 1 }
   0xd   : > { %s703_s20 = scalar_select %p582_p6, 1, 0 }
   0xe   : > { %p394_p10 = scmp.lt.s32.totalorder %s520_s12, 2  ;;  %p589_p11 = por %p63_p7, %p33_p0 }
   0xf   : > { %p593_p12 = por %p69_p8, %p39_p3  ;;  %s115_s23 = sand.u32 1, %s516_s11  }
  0x10   : > { %s704_s21 = scalar_select %p589_p11, 1, 0 }
  0x11   : > { %s705_s22 = scalar_select %p593_p12, 1, 0 }
  0x12   : > { %s381_s24 = sshll.u32 %s520_s12, 7  ;;  %s370_s25 = sshll.u32 %s115_s23, 3 }
  0x13   : > { %s602_s28 = scalar_lea.hbm %s697_s0, %s381_s24  ;;  %s119_s29 = scalar_lea.vmem [#allocation2], %s370_s25 }
  0x14   : > { %s127_s30 = sshll.u32 %s119_s29, 4  ;;  %p606_p13 = pnand %p394_p10, %p578_p5  ;;  %s610_s30 = int_to_ptr.vmem [resolvable:$true] %s127_s30 }
  0x15   : > { %s116_s4 = scalar_lea.sflag [#allocation3], %s115_s23  ;;  %s428_s5 = scalar_lea.hbm %s602_s28, 128 }
  0x16   : > { %p429_p2 = scmp.ne.s32.totalorder %s602_s28, %s428_s5  ;;  %p430_p3 = pneg %p606_p13 }
  0x17   : > { %s433_s8 = scalar_lea.hbm %s697_s0, 256  ;;  %p434_p5 = scmp.lt.s32.totalorder %s602_s28, %s697_s0 }
  0x18   : > { %p431_p4 = pnand %p430_p3, %p429_p2  ;;  %p435_p8 = scmp.lt.s32.totalorder %s433_s8, %s428_s5 }
  0x1a   : > { %p432_p7 = pneg %p431_p4  ;;  %p436_p10 = por %p435_p8, %p434_p5 }
  0x1c   : > { %p437_p9 = pnand %p436_p10, %p432_p7 }
  0x1e   : > { %440 = shalt.err (!%p437_p9)
}
  0x1f   : > { %s441_s17 = scalar_lea.vmem %s610_s30, 128  ;;  %s522_s19 = smov [#allocation2]  }
  0x20   : > { %p442_p0 = scmp.ne.s32.totalorder %s610_s30, %s441_s17  ;;  %s446_s23 = sshll.u32 %s522_s19, 4  ;;  %s447_s23 = int_to_ptr.vmem [resolvable:$false] %s446_s23 }
  0x21   : > { %s448_s24 = scalar_lea.vmem %s447_s23, 256  ;;  %p449_p4 = scmp.lt.s32.totalorder %s610_s30, %s447_s23 }
  0x22   : > { %p444_p1 = pnand %p442_p0, %p430_p3  ;;  %p450_p12 = scmp.lt.s32.totalorder %s448_s24, %s441_s17 }
  0x24   : > { %p445_p2 = pneg %p444_p1  ;;  %p451_p11 = por %p450_p12, %p449_p4 }
  0x26   : > { %p452_p6 = pnand %p451_p11, %p445_p2 }
  0x28   : > { %455 = shalt.err (!%p452_p6)
}
  0x29   : > { %389 = dma.hbm_to_vmem [thread:$0]  (!%p606_p13), %s602_s28, 128, %s610_s30, %s116_s4  }
  0x2a   : > { %p707_p9 = scmp.lt.s32.totalorder %s520_s12, 3  ;;  %p708_p7 = scmp.ge.s32.totalorder %s520_s12, 1 }
  0x2c   : > { %p133_p0 = pnand %p708_p7, %p707_p9 }
  0x2d   : > { %s637_s25 = sand.u32 (!%p133_p0), 1, %s512_s10   ;;  %p709_p6 = scmp.ne.s32.totalorder (!%p133_p0), %s703_s20, 0 }
  0x2e   : > { %136 = sbr.rel (%p133_p0) target bundleno = 266 (0x10a), region = 24  ;;  %s374_s26 = sshll.u32 (!%p133_p0), %s637_s25, 3 }
  0x2f   : > { %s139_s27 = scalar_lea.sflag (!%p133_p0), [#allocation3], %s637_s25  ;;  %s142_s29 = scalar_lea.vmem (!%p133_p0), [#allocation2], %s374_s26 }
  0x33   : > { %499 = dma.done.wait (%p709_p6), %s139_s27, 128  }
  0x34   : > { %501 = vsyncadd (%p709_p6), %s139_s27, 4294967168  ;;  %v172_v0 = vld [vmem:[%s142_s29] sm:$0xff]  ;;  %p168_p11 = scmp.lt.s32.totalorder %s560_s13, 1  ;;  %vm250_vm0 = vcmask 7168   ;;  %s378_s5 = sshll.u32 %s560_s13, 7  ;;  %vm245_vm1 = vcmask 64512  }
  0x35   : > { %v174_v1 = vunpack.c.h.bf16 %v172_v0  ;;  %v173_v2 = vunpack.c.l.bf16 %v172_v0  ;;  %s160_s6 = scalar_lea.vmem [#allocation5], %s374_s26  ;;  %s654_s16 = scalar_lea.hbm %s698_s1, %s378_s5 }
  0x36   : > { %s169_s28 = scalar_select %p168_p11, %s560_s13, 1 }
  0x37   : > { %205 = vmatprep.subr.mxu0 %v174_v1  ;;  %239 = vmatprep.mubr.f32.mxu0 %v174_v1  ;;  %v247_v3 = vadd.f32 %v174_v1, %v173_v2  ;;  %s270_s7 = sshll.u32 %s160_s6, 4  ;;  %s253_s17 = scalar_lea.sflag [#allocation4], %s637_s25  ;;  %s656_s7 = int_to_ptr.vmem [resolvable:$true] %s270_s7 }
  0x38   : > { %206 = vmatpush1.xpose.msra.mxu0 %v173_v2  ;;  %s376_s30 = sshll.u32 %s169_s28, 3  ;;  %s456_s19 = scalar_lea.vmem %s656_s7, 128 }
  0x39   : > { %248 = vadd.xlane.f32.xlu0 %v247_v3  ;;  %s171_s20 = scalar_lea.vmem %s699_s2, %s376_s30  ;;  %p457_p12 = scmp.ne.s32.totalorder %s656_s7, %s456_s19 }
  0x3a   : > { %p710_p13 = scmp.ne.s32.totalorder %s704_s21, 0  ;;  %s523_s13 = smov [#allocation5]  }
  0x3b   : > { %240 = vmatmul.mubr.f32.vlgmr.msra.gmra.mxu0 %v173_v2  ;;  %s460_s23 = sshll.u32 %s523_s13, 4  ;;  %s461_s23 = int_to_ptr.vmem [resolvable:$false] %s460_s23 }
  0x3c   : > { %p458_p1 = pnand %p457_p12, %p710_p13  ;;  %s462_s24 = scalar_lea.vmem %s461_s23, 256 }
  0x3d   : > { %p463_p5 = scmp.lt.s32.totalorder %s656_s7, %s461_s23  ;;  %p464_p8 = scmp.lt.s32.totalorder %s462_s24, %s456_s19 }
  0x3e   : > { %p459_p3 = pneg %p458_p1 }
  0x3f   : > { %p465_p10 = por %p464_p8, %p463_p5 }
  0x41   : > { %p466_p2 = pnand %p465_p10, %p459_p3 }
  0xc2   : > { %v249_v4 = vpop.xlane.xlu0 %248 }
  0xc3   : > { %251 = vst.msk [vmem:[%s171_s20] sm:$0xff] %vm250_vm0, %v249_v4 }
  0xfb   : > { %v241_v5 = vpop.f32.mrf.mxu0 }
  0xfc   : > { %246 = vst.msk [vmem:[%s160_s6] sm:$0xff] %vm245_vm1, %v241_v5 }
  0xfd   : > { %v243_v6 = vpop.f32.mrf.mxu0 }
  0xfe   : > { %469 = shalt.err (!%p466_p2)
}
  0xff   : > { %s470_s26 = scalar_lea.hbm %s654_s16, 128  ;;  %s474_s29 = scalar_lea.hbm %s698_s1, 256 }
 0x100   : > { %p471_p4 = scmp.ne.s32.totalorder %s654_s16, %s470_s26  ;;  %p475_p0 = scmp.lt.s32.totalorder %s654_s16, %s698_s1 }
 0x101   : > { %p476_p6 = scmp.lt.s32.totalorder %s474_s29, %s470_s26 }
 0x102   : > { %p472_p9 = pnand %p471_p4, %p710_p13 }
 0x103   : > { %p477_p11 = por %p476_p6, %p475_p0 }
 0x104   : > { %p473_p7 = pneg %p472_p9 }
 0x106   : > { %p478_p12 = pnand %p477_p11, %p473_p7 }
 0x108   : > { %481 = shalt.err (!%p478_p12)
}
 0x109   : > { %384 = dma.vmem_to_hbm [thread:$0]  (%p710_p13), %s656_s7, 128, %s654_s16, %s253_s17  }
 0x10a PF: > { %s285_s3 = sand.u32 1, %s508_s9   ;;  %p711_p1 = scmp.ne.s32.totalorder %s705_s22, 0 }
 0x10b   : > { %p712_p3 = scmp.ge.s32.totalorder %s520_s12, 2  ;;  %s286_s4 = scalar_lea.sflag [#allocation4], %s285_s3 }
 0x10d   : > { %p391_p5 = pnand %p712_p3, %p711_p1 }
 0x10f   : > { %p392_p8 = pneg %p391_p5 }
 0x111   : > { %503 = dma.done.wait (%p392_p8), %s286_s4, 128  }
 0x112   : > { %505 = vsyncadd (%p392_p8), %s286_s4, 4294967168  ;;  %p16_p10 = scmp.ge.s32.totalorder %s564_s15, 4   ;;  %s713_s9 = smov %s512_s10 }
 0x113   : > { %s714_s10 = smov %s516_s11  ;;  %s715_s11 = smov %s576_s18 }
 0x114   : > { %s716_s12 = smov %s564_s15  ;;  %18 = sbr.rel (!%p16_p10) target bundleno = 5 (0x5), region = 81 }
 0x119   :  { %298 = vsyncpa [#allocation3], 1 }
 0x11a   :  { %300 = vsyncpa [#allocation3 + $0x1], 1 }
 0x11b   :  { %301 = vsyncpa [#allocation4], 1 }
 0x11c   :  { %303 = vsyncpa [#allocation4 + $0x1], 1 }

</bundles_post_ra>
